<compile_context>
chip_gen: v5e
topology: v5e:2x2
jax: 0.10.0
libtpu: 0.0.40
codegen_flags: <defaults>
</compile_context>

<pallas_src>
import functools

import jax
import jax.numpy as jnp
from jax.experimental import pallas as pl
from jax.experimental.pallas import tpu as pltpu


def _leaky(v):
    return jnp.where(v > 0, v, 0.1 * v)


def _shift_pixels(h, s):
    """result[:, p] = h[:, (p + s) mod P] — cyclic shift along the lane (pixel) axis.

    Written as two static lane slices + concat (unambiguous semantics); could be
    replaced with pltpu.roll for a single XLU rotate.
    """
    P = h.shape[1]
    i = s % P
    if i == 0:
        return h
    return jnp.concatenate([h[:, i:], h[:, :i]], axis=1)


def _residual_block_kernel(x_ref, w1_ref, b1_ref, w2_ref, b2_ref, tm_ref,
                           o_ref, xacc_ref, *, W):
    """One (batch-element, repeat) grid step.

    x_ref   : (1, C, P)       input activation, P = H*W (lane-dense)
    w1_ref  : (1, Cmid, C)    folded 1x1 conv weight
    b1_ref  : (1, Cmid, 1)    folded 1x1 conv bias
    w2_ref  : (1, C, 9*Cmid)  folded 3x3 conv weight (tap-major, channel-minor)
    b2_ref  : (1, C, 1)       folded 3x3 conv bias
    tm_ref  : (9, 1, P)       0/1 border masks for the 9 taps
    o_ref   : (1, C, P)       output activation
    xacc_ref: (C, P) f32      VMEM-resident activation, carried across repeats
    """
    r = pl.program_id(1)

    @pl.when(r == 0)
    def _():
        xacc_ref[...] = x_ref[0].astype(jnp.float32)

    # ---- CNNBlock 1: 1x1 conv (pure channel matmul) + folded BN + LeakyReLU ----
    h = jnp.dot(w1_ref[0], xacc_ref[...], preferred_element_type=jnp.float32)
    h = _leaky(h + b1_ref[0])                        # (Cmid, P)

    # ---- CNNBlock 2: 3x3 conv (padding=1) as ONE im2col matmul ----
    taps = []
    for dy in range(3):
        for dx in range(3):
            s = (dy - 1) * W + (dx - 1)
            t = _shift_pixels(h, s)
            if (dy, dx) != (1, 1):                   # center tap never hits the border
                t = t * tm_ref[dy * 3 + dx]          # zero out-of-image pixels
            taps.append(t)
    patch = jnp.concatenate(taps, axis=0)            # (9*Cmid, P), cheap sublane concat
    y = jnp.dot(w2_ref[0], patch, preferred_element_type=jnp.float32)
    y = _leaky(y + b2_ref[0])                        # (C, P)

    # ---- residual add + outer LeakyReLU; keep activation resident in VMEM ----
    xacc_ref[...] = _leaky(y + xacc_ref[...])        # re-read x (short live range)

    @pl.when(r == pl.num_programs(1) - 1)
    def _():
        o_ref[0] = xacc_ref[...].astype(o_ref.dtype)


def residual_block_forward(x_nchw, folded):
    """Pallas forward.  x_nchw: (N, C, H, W) float32 (PyTorch layout)."""
    w1, b1, w2, b2 = folded                          # stacked over repeats
    N, C, H, W = x_nchw.shape
    R, Cmid, _ = w1.shape
    P = H * W
    x = x_nchw.reshape(N, C, P)                      # free: collapse minor dims

    # Precompute the 0/1 border masks for the 9 taps (tiny constant, VMEM-resident).
    yy = jnp.repeat(jnp.arange(H), W).reshape(1, P)
    xx = jnp.tile(jnp.arange(W), H).reshape(1, P)
    masks = []
    for dy in range(3):
        for dx in range(3):
            ys, xs = yy + dy - 1, xx + dx - 1
            masks.append(((ys >= 0) & (ys < H) & (xs >= 0) & (xs < W)
                          ).astype(jnp.float32))
    tapmask = jnp.stack(masks, axis=0)               # (9, 1, P)

    out = pl.pallas_call(
        functools.partial(_residual_block_kernel, W=W),
        out_shape=jax.ShapeDtypeStruct((N, C, P), x.dtype),
        grid_spec=pltpu.PrefetchScalarGridSpec(
            num_scalar_prefetch=0,
            grid=(N, R),                             # repeat axis innermost
            in_specs=[
                pl.BlockSpec((1, C, P), lambda n, r: (n, 0, 0)),
                pl.BlockSpec((1, Cmid, C), lambda n, r: (r, 0, 0)),
                pl.BlockSpec((1, Cmid, 1), lambda n, r: (r, 0, 0)),
                pl.BlockSpec((1, C, 9 * Cmid), lambda n, r: (r, 0, 0)),
                pl.BlockSpec((1, C, 1), lambda n, r: (r, 0, 0)),
                pl.BlockSpec((9, 1, P), lambda n, r: (0, 0, 0)),
            ],
            out_specs=pl.BlockSpec((1, C, P), lambda n, r: (n, 0, 0)),
            scratch_shapes=[pltpu.VMEM((C, P), jnp.float32)],
        ),
        compiler_params=pltpu.CompilerParams(
            dimension_semantics=("parallel", "arbitrary")),
    )(x, w1, b1, w2, b2, tapmask)
    return out.reshape(N, C, H, W)


# ----------------------------- parameter setup -----------------------------

def init_params(key, channels, num_repeats):
    Cmid = channels // 2
    params = []
    for _ in range(num_repeats):
        key, *ks = jax.random.split(key, 13)
        p = dict(
            conv1_w=0.2 * jax.random.normal(ks[0], (Cmid, channels, 1, 1), jnp.float32),
            conv1_b=0.1 * jax.random.normal(ks[1], (Cmid,), jnp.float32),
            g1=1.0 + 0.1 * jax.random.normal(ks[2], (Cmid,), jnp.float32),
            be1=0.1 * jax.random.normal(ks[3], (Cmid,), jnp.float32),
            rm1=0.1 * jax.random.normal(ks[4], (Cmid,), jnp.float32),
            rv1=1.0 + 0.1 * jnp.abs(jax.random.normal(ks[5], (Cmid,), jnp.float32)),
            conv2_w=0.1 * jax.random.normal(ks[6], (channels, Cmid, 3, 3), jnp.float32),
            conv2_b=0.1 * jax.random.normal(ks[7], (channels,), jnp.float32),
            g2=1.0 + 0.1 * jax.random.normal(ks[8], (channels,), jnp.float32),
            be2=0.1 * jax.random.normal(ks[9], (channels,), jnp.float32),
            rm2=0.1 * jax.random.normal(ks[10], (channels,), jnp.float32),
            rv2=1.0 + 0.1 * jnp.abs(jax.random.normal(ks[11], (channels,), jnp.float32)),
        )
        params.append(p)
    return params


def fold_params(params, eps=1e-5):
    """Fold eval-mode BN + conv bias into effective weights/biases, stacked over repeats."""
    w1s, b1s, w2s, b2s = [], [], [], []
    for p in params:
        Cmid, C = p["conv1_w"].shape[0], p["conv1_w"].shape[1]
        s1 = p["g1"] / jnp.sqrt(p["rv1"] + eps)                           # (Cmid,)
        w1s.append(p["conv1_w"][:, :, 0, 0] * s1[:, None])                # (Cmid, C)
        b1s.append(((p["conv1_b"] - p["rm1"]) * s1 + p["be1"])[:, None])  # (Cmid, 1)
        s2 = p["g2"] / jnp.sqrt(p["rv2"] + eps)                           # (C,)
        # (C, Cmid, 3, 3) -> (C, 3, 3, Cmid) -> (C, 9*Cmid): tap-major, channel-minor
        w2 = jnp.transpose(p["conv2_w"], (0, 2, 3, 1)).reshape(C, 9 * Cmid)
        w2s.append(w2 * s2[:, None])                                      # (C, 9*Cmid)
        b2s.append(((p["conv2_b"] - p["rm2"]) * s2 + p["be2"])[:, None])  # (C, 1)
    return (jnp.stack(w1s), jnp.stack(b1s), jnp.stack(w2s), jnp.stack(b2s))


# ------------------------- pure-JAX reference check -------------------------

def ref_forward(x_nchw, params, eps=1e-5):
    """Reference from the RAW params (conv -> eval BN -> LeakyReLU), NCHW."""
    dn = ("NCHW", "OIHW", "NCHW")
    x = x_nchw.astype(jnp.float32)

    def bn(v, g, be, rm, rv):
        shp = (1, -1, 1, 1)
        return ((v - rm.reshape(shp)) / jnp.sqrt(rv.reshape(shp) + eps)
                * g.reshape(shp) + be.reshape(shp))

    for p in params:
        h = jax.lax.conv_general_dilated(x, p["conv1_w"], (1, 1), "VALID",
                                         dimension_numbers=dn)
        h = h + p["conv1_b"].reshape(1, -1, 1, 1)
        h = _leaky(bn(h, p["g1"], p["be1"], p["rm1"], p["rv1"]))
        y = jax.lax.conv_general_dilated(h, p["conv2_w"], (1, 1), ((1, 1), (1, 1)),
                                         dimension_numbers=dn)
        y = y + p["conv2_b"].reshape(1, -1, 1, 1)
        y = _leaky(bn(y, p["g2"], p["be2"], p["rm2"], p["rv2"]))
        x = _leaky(y + x)
    return x


if __name__ == "__main__":
    N, C, H, W = 2, 32, 16, 16
    num_repeats = 2

    key = jax.random.PRNGKey(0)
    kx, kp = jax.random.split(key)
    x_nchw = jax.random.normal(kx, (N, C, H, W), jnp.float32)

    params = init_params(kp, C, num_repeats)
    folded = fold_params(params)

    out = residual_block_forward(x_nchw, folded)
    out = jax.block_until_ready(out)
    assert out.shape == (N, C, H, W)

    ref = ref_forward(x_nchw, params)
    if not jnp.allclose(out, ref, atol=1e-3, rtol=1e-3):
        err = float(jnp.max(jnp.abs(out - ref)))
        raise AssertionError(f"Pallas kernel mismatch vs JAX reference (max abs err {err})")

    print("KERNEL_OK")
</pallas_src>

<mosaic_0001>
module attributes {stable_mosaic.version = 11 : i64} {
  func.func @_residual_block_kernel(%arg0: i32, %arg1: i32, %arg2: memref<1x32x256xf32, #tpu.memory_space<vmem>>, %arg3: memref<1x16x32xf32, #tpu.memory_space<vmem>>, %arg4: memref<1x16x1xf32, #tpu.memory_space<vmem>>, %arg5: memref<1x32x144xf32, #tpu.memory_space<vmem>>, %arg6: memref<1x32x1xf32, #tpu.memory_space<vmem>>, %arg7: memref<9x1x256xf32, #tpu.memory_space<vmem>>, %arg8: memref<1x32x256xf32, #tpu.memory_space<vmem>>, %arg9: memref<32x256xf32, #tpu.memory_space<vmem>>) attributes {dimension_semantics = [#tpu.dimension_semantics<parallel>, #tpu.dimension_semantics<arbitrary>], iteration_bounds = array<i64: 2, 2>, scalar_prefetch = 0 : i64, scratch_operands = 1 : i64, tpu.core_type = #tpu.core_type<tc>, window_params = [{transform_indices = @transform_0, window_bounds = array<i64: 1, 32, 256>}, {transform_indices = @transform_1, window_bounds = array<i64: 1, 16, 32>}, {transform_indices = @transform_2, window_bounds = array<i64: 1, 16, 1>}, {transform_indices = @transform_3, window_bounds = array<i64: 1, 32, 144>}, {transform_indices = @transform_4, window_bounds = array<i64: 1, 32, 1>}, {pipeline_mode = #tpu.pipeline_mode<synchronous>, transform_indices = @transform_5, window_bounds = array<i64: 9, 1, 256>}, {transform_indices = @transform_6, window_bounds = array<i64: 1, 32, 256>}]} {
    %c0_i32 = arith.constant 0 : i32
    %0 = arith.cmpi eq, %arg1, %c0_i32 : i32
    %1 = arith.extui %0 : i1 to i32
    %c0_i32_0 = arith.constant 0 : i32
    %2 = arith.cmpi ne, %1, %c0_i32_0 : i32
    scf.if %2 {
      %c0_43 = arith.constant 0 : index
      %c0_44 = arith.constant 0 : index
      %c0_45 = arith.constant 0 : index
      %96 = vector.load %arg2[%c0_43, %c0_44, %c0_45] : memref<1x32x256xf32, #tpu.memory_space<vmem>>, vector<1x32x256xf32>
      %97 = vector.shape_cast %96 : vector<1x32x256xf32> to vector<32x256xf32>
      %c0_46 = arith.constant 0 : index
      %c0_47 = arith.constant 0 : index
      %98 = vector.load %arg9[%c0_46, %c0_47] : memref<32x256xf32, #tpu.memory_space<vmem>>, vector<32x256xf32>
      tpu.vector_store %arg9[%c0_46, %c0_47], %97 {strides = array<i32>} : memref<32x256xf32, #tpu.memory_space<vmem>>, vector<32x256xf32>,
    } else {
    }
    %c0 = arith.constant 0 : index
    %c0_1 = arith.constant 0 : index
    %c0_2 = arith.constant 0 : index
    %3 = vector.load %arg3[%c0, %c0_1, %c0_2] : memref<1x16x32xf32, #tpu.memory_space<vmem>>, vector<1x16x32xf32>
    %4 = vector.shape_cast %3 : vector<1x16x32xf32> to vector<16x32xf32>
    %c0_3 = arith.constant 0 : index
    %c0_4 = arith.constant 0 : index
    %5 = vector.load %arg9[%c0_3, %c0_4] : memref<32x256xf32, #tpu.memory_space<vmem>>, vector<32x256xf32>
    %cst = arith.constant dense<0.000000e+00> : vector<16x256xf32>
    %6 = tpu.matmul %4, %5, %cst {dimension_numbers = #tpu.dot_dimension_numbers<[1], [0], [0], [1], [0, 0, 1, 1], [], []>} : vector<16x32xf32>, vector<32x256xf32>, vector<16x256xf32> -> vector<16x256xf32>
    %c0_5 = arith.constant 0 : index
    %c0_6 = arith.constant 0 : index
    %c0_7 = arith.constant 0 : index
    %7 = vector.load %arg4[%c0_5, %c0_6, %c0_7] : memref<1x16x1xf32, #tpu.memory_space<vmem>>, vector<1x16x1xf32>
    %8 = vector.shape_cast %7 : vector<1x16x1xf32> to vector<16x1xf32>
    %9 = vector.broadcast %8 : vector<16x1xf32> to vector<16x256xf32>
    %10 = arith.addf %6, %9 : vector<16x256xf32>
    %cst_8 = arith.constant 0.000000e+00 : f32
    %11 = vector.broadcast %cst_8 : f32 to vector<16x256xf32>
    %12 = arith.cmpf ogt, %10, %11 : vector<16x256xf32>
    %cst_9 = arith.constant 1.000000e-01 : f32
    %13 = vector.broadcast %cst_9 : f32 to vector<16x256xf32>
    %14 = arith.mulf %13, %10 : vector<16x256xf32>
    %15 = arith.select %12, %10, %14 : vector<16x256xi1>, vector<16x256xf32>
    %16 = vector.extract_strided_slice %15 {offsets = [0, 239], sizes = [16, 17], strides = [1, 1]} : vector<16x256xf32> to vector<16x17xf32>
    %17 = vector.extract_strided_slice %15 {offsets = [0, 0], sizes = [16, 239], strides = [1, 1]} : vector<16x256xf32> to vector<16x239xf32>
    %18 = tpu.concatenate %16, %17 in 1 : vector<16x17xf32>, vector<16x239xf32> -> vector<16x256xf32>
    %c0_10 = arith.constant 0 : index
    %c0_11 = arith.constant 0 : index
    %c0_12 = arith.constant 0 : index
    %19 = vector.load %arg7[%c0_10, %c0_11, %c0_12] : memref<9x1x256xf32, #tpu.memory_space<vmem>>, vector<1x1x256xf32>
    %20 = vector.shape_cast %19 : vector<1x1x256xf32> to vector<1x256xf32>
    %21 = vector.broadcast %20 : vector<1x256xf32> to vector<16x256xf32>
    %22 = arith.mulf %18, %21 : vector<16x256xf32>
    %23 = vector.extract_strided_slice %15 {offsets = [0, 240], sizes = [16, 16], strides = [1, 1]} : vector<16x256xf32> to vector<16x16xf32>
    %24 = vector.extract_strided_slice %15 {offsets = [0, 0], sizes = [16, 240], strides = [1, 1]} : vector<16x256xf32> to vector<16x240xf32>
    %25 = tpu.concatenate %23, %24 in 1 : vector<16x16xf32>, vector<16x240xf32> -> vector<16x256xf32>
    %c1 = arith.constant 1 : index
    %c0_13 = arith.constant 0 : index
    %c0_14 = arith.constant 0 : index
    %26 = vector.load %arg7[%c1, %c0_13, %c0_14] : memref<9x1x256xf32, #tpu.memory_space<vmem>>, vector<1x1x256xf32>
    %27 = vector.shape_cast %26 : vector<1x1x256xf32> to vector<1x256xf32>
    %28 = vector.broadcast %27 : vector<1x256xf32> to vector<16x256xf32>
    %29 = arith.mulf %25, %28 : vector<16x256xf32>
    %30 = vector.extract_strided_slice %15 {offsets = [0, 241], sizes = [16, 15], strides = [1, 1]} : vector<16x256xf32> to vector<16x15xf32>
    %31 = vector.extract_strided_slice %15 {offsets = [0, 0], sizes = [16, 241], strides = [1, 1]} : vector<16x256xf32> to vector<16x241xf32>
    %32 = tpu.concatenate %30, %31 in 1 : vector<16x15xf32>, vector<16x241xf32> -> vector<16x256xf32>
    %c2 = arith.constant 2 : index
    %c0_15 = arith.constant 0 : index
    %c0_16 = arith.constant 0 : index
    %33 = vector.load %arg7[%c2, %c0_15, %c0_16] : memref<9x1x256xf32, #tpu.memory_space<vmem>>, vector<1x1x256xf32>
    %34 = vector.shape_cast %33 : vector<1x1x256xf32> to vector<1x256xf32>
    %35 = vector.broadcast %34 : vector<1x256xf32> to vector<16x256xf32>
    %36 = arith.mulf %32, %35 : vector<16x256xf32>
    %37 = vector.extract_strided_slice %15 {offsets = [0, 255], sizes = [16, 1], strides = [1, 1]} : vector<16x256xf32> to vector<16x1xf32>
    %38 = vector.extract_strided_slice %15 {offsets = [0, 0], sizes = [16, 255], strides = [1, 1]} : vector<16x256xf32> to vector<16x255xf32>
    %39 = tpu.concatenate %37, %38 in 1 : vector<16x1xf32>, vector<16x255xf32> -> vector<16x256xf32>
    %c3 = arith.constant 3 : index
    %c0_17 = arith.constant 0 : index
    %c0_18 = arith.constant 0 : index
    %40 = vector.load %arg7[%c3, %c0_17, %c0_18] : memref<9x1x256xf32, #tpu.memory_space<vmem>>, vector<1x1x256xf32>
    %41 = vector.shape_cast %40 : vector<1x1x256xf32> to vector<1x256xf32>
    %42 = vector.broadcast %41 : vector<1x256xf32> to vector<16x256xf32>
    %43 = arith.mulf %39, %42 : vector<16x256xf32>
    %44 = vector.extract_strided_slice %15 {offsets = [0, 1], sizes = [16, 255], strides = [1, 1]} : vector<16x256xf32> to vector<16x255xf32>
    %45 = vector.extract_strided_slice %15 {offsets = [0, 0], sizes = [16, 1], strides = [1, 1]} : vector<16x256xf32> to vector<16x1xf32>
    %46 = tpu.concatenate %44, %45 in 1 : vector<16x255xf32>, vector<16x1xf32> -> vector<16x256xf32>
    %c5 = arith.constant 5 : index
    %c0_19 = arith.constant 0 : index
    %c0_20 = arith.constant 0 : index
    %47 = vector.load %arg7[%c5, %c0_19, %c0_20] : memref<9x1x256xf32, #tpu.memory_space<vmem>>, vector<1x1x256xf32>
    %48 = vector.shape_cast %47 : vector<1x1x256xf32> to vector<1x256xf32>
    %49 = vector.broadcast %48 : vector<1x256xf32> to vector<16x256xf32>
    %50 = arith.mulf %46, %49 : vector<16x256xf32>
    %51 = vector.extract_strided_slice %15 {offsets = [0, 15], sizes = [16, 241], strides = [1, 1]} : vector<16x256xf32> to vector<16x241xf32>
    %52 = vector.extract_strided_slice %15 {offsets = [0, 0], sizes = [16, 15], strides = [1, 1]} : vector<16x256xf32> to vector<16x15xf32>
    %53 = tpu.concatenate %51, %52 in 1 : vector<16x241xf32>, vector<16x15xf32> -> vector<16x256xf32>
    %c6 = arith.constant 6 : index
    %c0_21 = arith.constant 0 : index
    %c0_22 = arith.constant 0 : index
    %54 = vector.load %arg7[%c6, %c0_21, %c0_22] : memref<9x1x256xf32, #tpu.memory_space<vmem>>, vector<1x1x256xf32>
    %55 = vector.shape_cast %54 : vector<1x1x256xf32> to vector<1x256xf32>
    %56 = vector.broadcast %55 : vector<1x256xf32> to vector<16x256xf32>
    %57 = arith.mulf %53, %56 : vector<16x256xf32>
    %58 = vector.extract_strided_slice %15 {offsets = [0, 16], sizes = [16, 240], strides = [1, 1]} : vector<16x256xf32> to vector<16x240xf32>
    %59 = vector.extract_strided_slice %15 {offsets = [0, 0], sizes = [16, 16], strides = [1, 1]} : vector<16x256xf32> to vector<16x16xf32>
    %60 = tpu.concatenate %58, %59 in 1 : vector<16x240xf32>, vector<16x16xf32> -> vector<16x256xf32>
    %c7 = arith.constant 7 : index
    %c0_23 = arith.constant 0 : index
    %c0_24 = arith.constant 0 : index
    %61 = vector.load %arg7[%c7, %c0_23, %c0_24] : memref<9x1x256xf32, #tpu.memory_space<vmem>>, vector<1x1x256xf32>
    %62 = vector.shape_cast %61 : vector<1x1x256xf32> to vector<1x256xf32>
    %63 = vector.broadcast %62 : vector<1x256xf32> to vector<16x256xf32>
    %64 = arith.mulf %60, %63 : vector<16x256xf32>
    %65 = vector.extract_strided_slice %15 {offsets = [0, 17], sizes = [16, 239], strides = [1, 1]} : vector<16x256xf32> to vector<16x239xf32>
    %66 = vector.extract_strided_slice %15 {offsets = [0, 0], sizes = [16, 17], strides = [1, 1]} : vector<16x256xf32> to vector<16x17xf32>
    %67 = tpu.concatenate %65, %66 in 1 : vector<16x239xf32>, vector<16x17xf32> -> vector<16x256xf32>
    %c8 = arith.constant 8 : index
    %c0_25 = arith.constant 0 : index
    %c0_26 = arith.constant 0 : index
    %68 = vector.load %arg7[%c8, %c0_25, %c0_26] : memref<9x1x256xf32, #tpu.memory_space<vmem>>, vector<1x1x256xf32>
    %69 = vector.shape_cast %68 : vector<1x1x256xf32> to vector<1x256xf32>
    %70 = vector.broadcast %69 : vector<1x256xf32> to vector<16x256xf32>
    %71 = arith.mulf %67, %70 : vector<16x256xf32>
    %72 = tpu.concatenate %22, %29, %36, %43, %15, %50, %57, %64, %71 in 0 : vector<16x256xf32>, vector<16x256xf32>, vector<16x256xf32>, vector<16x256xf32>, vector<16x256xf32>, vector<16x256xf32>, vector<16x256xf32>, vector<16x256xf32>, vector<16x256xf32> -> vector<144x256xf32>
    %c0_27 = arith.constant 0 : index
    %c0_28 = arith.constant 0 : index
    %c0_29 = arith.constant 0 : index
    %73 = vector.load %arg5[%c0_27, %c0_28, %c0_29] : memref<1x32x144xf32, #tpu.memory_space<vmem>>, vector<1x32x144xf32>
    %74 = vector.shape_cast %73 : vector<1x32x144xf32> to vector<32x144xf32>
    %cst_30 = arith.constant dense<0.000000e+00> : vector<32x256xf32>
    %75 = tpu.matmul %74, %72, %cst_30 {dimension_numbers = #tpu.dot_dimension_numbers<[1], [0], [0], [1], [0, 0, 1, 1], [], []>} : vector<32x144xf32>, vector<144x256xf32>, vector<32x256xf32> -> vector<32x256xf32>
    %c0_31 = arith.constant 0 : index
    %c0_32 = arith.constant 0 : index
    %c0_33 = arith.constant 0 : index
    %76 = vector.load %arg6[%c0_31, %c0_32, %c0_33] : memref<1x32x1xf32, #tpu.memory_space<vmem>>, vector<1x32x1xf32>
    %77 = vector.shape_cast %76 : vector<1x32x1xf32> to vector<32x1xf32>
    %78 = vector.broadcast %77 : vector<32x1xf32> to vector<32x256xf32>
    %79 = arith.addf %75, %78 : vector<32x256xf32>
    %cst_34 = arith.constant 0.000000e+00 : f32
    %80 = vector.broadcast %cst_34 : f32 to vector<32x256xf32>
    %81 = arith.cmpf ogt, %79, %80 : vector<32x256xf32>
    %cst_35 = arith.constant 1.000000e-01 : f32
    %82 = vector.broadcast %cst_35 : f32 to vector<32x256xf32>
    %83 = arith.mulf %82, %79 : vector<32x256xf32>
    %84 = arith.select %81, %79, %83 : vector<32x256xi1>, vector<32x256xf32>
    %c0_36 = arith.constant 0 : index
    %c0_37 = arith.constant 0 : index
    %85 = vector.load %arg9[%c0_36, %c0_37] : memref<32x256xf32, #tpu.memory_space<vmem>>, vector<32x256xf32>
    %86 = arith.addf %84, %85 : vector<32x256xf32>
    %cst_38 = arith.constant 0.000000e+00 : f32
    %87 = vector.broadcast %cst_38 : f32 to vector<32x256xf32>
    %88 = arith.cmpf ogt, %86, %87 : vector<32x256xf32>
    %cst_39 = arith.constant 1.000000e-01 : f32
    %89 = vector.broadcast %cst_39 : f32 to vector<32x256xf32>
    %90 = arith.mulf %89, %86 : vector<32x256xf32>
    %91 = arith.select %88, %86, %90 : vector<32x256xi1>, vector<32x256xf32>
    %c0_40 = arith.constant 0 : index
    %c0_41 = arith.constant 0 : index
    %92 = vector.load %arg9[%c0_40, %c0_41] : memref<32x256xf32, #tpu.memory_space<vmem>>, vector<32x256xf32>
    tpu.vector_store %arg9[%c0_40, %c0_41], %91 {strides = array<i32>} : memref<32x256xf32, #tpu.memory_space<vmem>>, vector<32x256xf32>,
    %c1_i32 = arith.constant 1 : i32
    %93 = arith.cmpi eq, %arg1, %c1_i32 : i32
    %94 = arith.extui %93 : i1 to i32
    %c0_i32_42 = arith.constant 0 : i32
    %95 = arith.cmpi ne, %94, %c0_i32_42 : i32
    scf.if %95 {
      %c0_43 = arith.constant 0 : index
      %c0_44 = arith.constant 0 : index
      %96 = vector.load %arg9[%c0_43, %c0_44] : memref<32x256xf32, #tpu.memory_space<vmem>>, vector<32x256xf32>
      %c0_45 = arith.constant 0 : index
      %c0_46 = arith.constant 0 : index
      %c0_47 = arith.constant 0 : index
      %97 = vector.load %arg8[%c0_45, %c0_46, %c0_47] : memref<1x32x256xf32, #tpu.memory_space<vmem>>, vector<1x32x256xf32>
      %98 = vector.shape_cast %97 : vector<1x32x256xf32> to vector<32x256xf32>
      %99 = vector.shape_cast %96 : vector<32x256xf32> to vector<1x32x256xf32>
      tpu.vector_store %arg8[%c0_45, %c0_46, %c0_47], %99 {strides = array<i32>} : memref<1x32x256xf32, #tpu.memory_space<vmem>>, vector<1x32x256xf32>,
    } else {
    }
    return
  }
  func.func @transform_0(%arg0: i32, %arg1: i32) -> (i32, i32, i32) {
    %c0_i32 = arith.constant 0 : i32
    %c0_i32_0 = arith.constant 0 : i32
    %c0_i32_1 = arith.constant 0 : i32
    return %arg0, %c0_i32, %c0_i32_0 : i32, i32, i32
  }
  func.func @transform_1(%arg0: i32, %arg1: i32) -> (i32, i32, i32) {
    %c0_i32 = arith.constant 0 : i32
    %c0_i32_0 = arith.constant 0 : i32
    %c0_i32_1 = arith.constant 0 : i32
    return %arg1, %c0_i32, %c0_i32_0 : i32, i32, i32
  }
  func.func @transform_2(%arg0: i32, %arg1: i32) -> (i32, i32, i32) {
    %c0_i32 = arith.constant 0 : i32
    %c0_i32_0 = arith.constant 0 : i32
    %c0_i32_1 = arith.constant 0 : i32
    return %arg1, %c0_i32, %c0_i32_0 : i32, i32, i32
  }
  func.func @transform_3(%arg0: i32, %arg1: i32) -> (i32, i32, i32) {
    %c0_i32 = arith.constant 0 : i32
    %c0_i32_0 = arith.constant 0 : i32
    %c0_i32_1 = arith.constant 0 : i32
    return %arg1, %c0_i32, %c0_i32_0 : i32, i32, i32
  }
  func.func @transform_4(%arg0: i32, %arg1: i32) -> (i32, i32, i32) {
    %c0_i32 = arith.constant 0 : i32
    %c0_i32_0 = arith.constant 0 : i32
    %c0_i32_1 = arith.constant 0 : i32
    return %arg1, %c0_i32, %c0_i32_0 : i32, i32, i32
  }
  func.func @transform_5(%arg0: i32, %arg1: i32) -> (i32, i32, i32) {
    %c0_i32 = arith.constant 0 : i32
    %c0_i32_0 = arith.constant 0 : i32
    %c0_i32_1 = arith.constant 0 : i32
    %c0_i32_2 = arith.constant 0 : i32
    return %c0_i32, %c0_i32_0, %c0_i32_1 : i32, i32, i32
  }
  func.func @transform_6(%arg0: i32, %arg1: i32) -> (i32, i32, i32) {
    %c0_i32 = arith.constant 0 : i32
    %c0_i32_0 = arith.constant 0 : i32
    %c0_i32_1 = arith.constant 0 : i32
    return %arg0, %c0_i32, %c0_i32_0 : i32, i32, i32
  }
}

</mosaic_0001>

<bundles_post_ra>
// kernel: tpu_custom_call.1
= control target key start
LH: loop header
LB: loop body
LE: loop exit
PB: predicated region body
PF: predicated region fallthrough
CT: control target
= control target key end

     0   :  { %s2059_s0 = inlined_call_operand.hbm [shape: f32[2,32,256], index: 0, kind: input, shape index: {}]   ;;  %s2060_s1 = inlined_call_operand.vmem [shape: f32[2,16,32], index: 1, kind: input, shape index: {}]   ;;  %s2061_s2 = inlined_call_operand.vmem [shape: f32[2,16,1], index: 2, kind: input, shape index: {}]   ;;  %s2062_s3 = inlined_call_operand.hbm [shape: f32[2,32,144], index: 3, kind: input, shape index: {}]   ;;  %s2063_s4 = inlined_call_operand.vmem [shape: f32[2,32,1], index: 4, kind: input, shape index: {}]   ;;  %s2064_s5 = inlined_call_operand.vmem [shape: f32[9,1,256], index: 5, kind: input, shape index: {}]   ;;  %s2065_s6 = inlined_call_operand.hbm [shape: f32[2,32,256], index: 6, kind: output, shape index: {}]  }
   0x1   :  { %2077 = sst [smem:[#allocation18_spill]] %s2059_s0 }
   0x2   :  { %2078 = sst [smem:[#allocation19_spill]] %s2060_s1 }
   0x3   :  { %2079 = sst [smem:[#allocation20_spill]] %s2064_s5 }
   0x4   :  { %2080 = sst [smem:[#allocation21_spill]] %s2065_s6 }
   0x5   :  { %11 = vsyncpa [#allocation4], 0 }
   0x6   :  { %13 = vsyncpa [#allocation4 + $0x1], 0 }
   0x7   :  { %14 = vsyncpa [#allocation7], 0 }
   0x8   :  { %16 = vsyncpa [#allocation7 + $0x1], 0 }
   0x9   :  { %17 = vsyncpa [#allocation5], 0 }
   0xa   :  { %19 = vsyncpa [#allocation5 + $0x1], 0  ;;  %s1564_s21 = smov 0   ;;  %s1566_s22 = smov 0  }
   0xb   :  { %s1568_s23 = smov 0   ;;  %s1570_s24 = smov 0  }
   0xc   :  { %s1572_s25 = smov 0   ;;  %s1574_s26 = smov 0  }
   0xd   :  { %s1576_s27 = smov 0   ;;  %s1578_s28 = smov 0  }
   0xe   :  { %s1580_s29 = smov 0   ;;  %s1582_s30 = smov 0  }
   0xf   :  { %s1584_s7 = smov 0  }
  0x10 LB: > { %2081 = sst [smem:[#allocation12_spill]] %s1487_s24  ;;  %s1139_s8 = sadd.s32 4294967295, %s1515_s7   ;;  %s1515_s7 = sphi %s1584_s7, %s25_s7   ;;  %s1511_s30 = sphi %s1582_s30, %s2119_s30   ;;  %s1507_s29 = sphi %s1580_s29, %s2118_s29   ;;  %s1503_s28 = sphi %s1578_s28, %s2117_s28   ;;  %s1499_s27 = sphi %s1576_s27, %s2116_s27   ;;  %s1495_s26 = sphi %s1574_s26, %s2115_s26   ;;  %s1491_s25 = sphi %s1572_s25, %s2114_s25   ;;  %s1487_s24 = sphi %s1570_s24, %s2113_s24   ;;  %s1483_s23 = sphi %s1568_s23, %s2112_s23   ;;  %s1479_s22 = sphi %s1566_s22, %s2111_s22   ;;  %s1475_s21 = sphi %s1564_s21, %s2110_s21  }
  0x11   : > { %2082 = sst [smem:[#allocation13_spill]] %s1503_s28  ;;  %s1140_s9 = sadd.s32 4294967294, %s1515_s7  }
  0x12   : > { %p51_p0 = scmp.ne.s32.totalorder %s1495_s26, %s1491_s25  ;;  %p52_p1 = scmp.eq.s32.totalorder %s1515_s7, 0 }
  0x13   : > { %p57_p2 = scmp.ne.s32.totalorder %s1491_s25, %s1487_s24  ;;  %p1628_p3 = scmp.eq.s32.totalorder %s1139_s8, 0 }
  0x14   : > { %p1634_p4 = por %p52_p1, %p51_p0  ;;  %p206_p5 = scmp.eq.s32.totalorder %s1139_s8, 3 }
  0x15   : > { %p1640_p6 = por %p1628_p3, %p57_p2  ;;  %p212_p7 = scmp.eq.s32.totalorder %s1140_s9, 3 }
  0x16   : > { %p1644_p8 = por %p206_p5, %p51_p0  ;;  %p1224_p10 = scmp.lt.s32.totalorder %s1515_s7, 4 }
  0x17   : > { %p1648_p9 = por %p212_p7, %p57_p2  ;;  %s235_s17 = sand.u32 1, %s1495_s26  }
  0x18   : > { %s2086_s15 = scalar_select %p1644_p8, 1, 0 }
  0x19   : > { %s2088_s16 = scalar_select %p1648_p9, 1, 0 }
  0x1a   : > { %2087 = sst [smem:[#allocation14_spill]] %s2086_s15  ;;  %s1185_s18 = sshll.u32 %s1511_s30, 6 }
  0x1b   : > { %2089 = sst [smem:[#allocation15_spill]] %s2088_s16  ;;  %s1143_s19 = sshll.u32 %s235_s17, 6 }
  0x1c   : > { %s2090_s0 = sld [smem:[#allocation18_spill]]  ;;  %s239_s9 = scalar_lea.vmem [#allocation3], %s1143_s19 }
  0x1d   : > { %s247_s24 = sshll.u32 %s239_s9, 4  ;;  %p1214_p11 = pnand %p1224_p10, %p1634_p4  ;;  %s248_s24 = int_to_ptr.vmem [resolvable:$true] %s247_s24 }
  0x1e   : > { %p1149_p12 = scmp.ge.s32.totalorder %s1515_s7, 1  ;;  %p301_p13 = scmp.lt.s32.totalorder %s1515_s7, 5 }
  0x1f   : > { %s2068_s20 = smov 16   ;;  %s34_s13 = sadd.s32 1, %s1507_s29 }
  0x20   : > { %p1667_p0 = pnand %p1149_p12, %p301_p13  ;;  %p35_p2 = scmp.ge.s32.totalorder %s34_s13, 2 }
  0x21   : > { %s122_s8 = sadd.s32 1, %s1483_s23  ;;  %p129_p4 = scmp.ne.s32.totalorder %s1483_s23, %s1479_s22 }
  0x22   : > { %s244_s11 = scalar_lea.hbm %s2090_s0, %s1185_s18  ;;  %s236_s18 = scalar_lea.sflag [#allocation4], %s235_s17 }
  0x23   : > { %s245_s10 = sshll.u32 %s244_s11, 4  ;;  %s2067_s11 = smov 256   ;;  %s246_s10 = int_to_ptr.hbm [resolvable:$true] %s245_s10 }
  0x24   : > { %1216 = dma.hbm_to_vmem [thread:$0]  (!%p1214_p11), %s246_s10, 1024, %s248_s24, %s236_s18, %s2067_s11, %s2067_s11, %s2068_s20  }
  0x25   : > { %p135_p5 = scmp.ne.s32.totalorder %s1479_s22, %s1475_s21  ;;  %s2121_s13 = smov (%p35_p2, %s34_s13), 0 }
  0x26   : > { %2092 = sst [smem:[#allocation16_spill]] %s2121_s13  ;;  %s2093_s17 = sadd.s32 1, %s1511_s30 }
  0x27   : > { %s2123_s17 = smov (!%p35_p2, %s2093_s17), %s1511_s30  ;;  %s119_s24 = ssub.s32 %s1507_s29, %s2121_s13 }
  0x28   : > { %p1686_p7 = por %p129_p4, %p52_p1  ;;  %p39_p11 = scmp.ge.s32.totalorder %s2123_s17, 2 }
  0x29   : > { %p120_p12 = scmp.eq.s32.totalorder %s119_s24, 0  ;;  %p1692_p13 = por %p135_p5, %p1628_p3 }
  0x2a   : > { %s273_s21 = sand.u32 1, %s1483_s23   ;;  %s2125_s17 = smov (%p39_p11, %s2123_s17), 0 }
  0x2b   : > { %2096 = sst [smem:[#allocation17_spill]] %s2125_s17  ;;  %s41_s11 = ssub.s32 %s1511_s30, %s2125_s17 }
  0x2c   : > { %s1700_s18 = scalar_select %p120_p12, %s1483_s23, %s122_s8  }
  0x2d   : > { %p42_p1 = scmp.eq.s32.totalorder %s41_s11, 0  ;;  %s1146_s20 = sshll.u32 %s273_s21, 6 }
  0x2e   : > { %s1186_s0 = sshll.u32 %s1507_s29, 6  ;;  %s2097_s13 = sadd.s32 1, %s1495_s26 }
  0x2f   : > { %s1708_s16 = scalar_select %p42_p1, %s1495_s26, %s2097_s13  }
  0x30   : > { %s282_s6 = scalar_lea.hbm %s2062_s3, %s1186_s0  ;;  %s277_s15 = scalar_lea.vmem [#allocation6], %s1146_s20 }
  0x31   : > { %s285_s28 = sshll.u32 %s277_s15, 4  ;;  %s283_s5 = sshll.u32 %s282_s6, 4  ;;  %s286_s28 = int_to_ptr.vmem [resolvable:$true] %s285_s28  ;;  %s284_s5 = int_to_ptr.hbm [resolvable:$true] %s283_s5 }
  0x32   : > { %p1217_p3 = pnand %p1224_p10, %p1686_p7  ;;  %s274_s8 = scalar_lea.sflag [#allocation7], %s273_s21 }
  0x33   : > { %s2098_s17 = smov 16   ;;  %s2099_s11 = smov 256  }
  0x34   : > { %1219 = dma.hbm_to_vmem [thread:$0]  (!%p1217_p3), %s284_s5, 1024, %s286_s28, %s274_s8, %s2099_s11, %s2099_s11, %s2098_s17  }
  0x35   : > { %305 = sbr.rel (%p1667_p0) target bundleno = 626 (0x272), region = 44  ;;  %s1723_s13 = sand.u32 (!%p1667_p0), 1, %s1491_s25  }
  0x36   : > { %s1150_s0 = sshll.u32 (!%p1667_p0), %s1723_s13, 6  ;;  %s308_s6 = scalar_lea.sflag (!%p1667_p0), [#allocation4], %s1723_s13 }
  0x37   : > { %s1727_s15 = scalar_lea.vmem (!%p1667_p0), [#allocation3], %s1150_s0 }
  0x3a   : > { %1462 = dma.done.wait (%p1640_p6), %s308_s6, 1024  }
  0x3b   : > { %1464 = vsyncadd (%p1640_p6), %s308_s6, 4294966272  ;;  %s317_s5 = sand.u32 1, %s1479_s22  }
  0x3c   : > { %s1151_s28 = sshll.u32 %s317_s5, 6  ;;  %s318_s20 = scalar_lea.sflag [#allocation7], %s317_s5 }
  0x3d   : > { %s1734_s19 = scalar_lea.vmem [#allocation6], %s1151_s28 }
  0x3e   : > { %1466 = dma.done.wait (%p1692_p13), %s318_s20, 1024  }
  0x3f   : > { %1468 = vsyncadd (%p1692_p13), %s318_s20, 4294966272  ;;  %p371_p10 = scmp.lt.s32.totalorder %s1499_s27, 1  ;;  %s2100_s1 = sld [smem:[#allocation19_spill]] }
  0x40   : > { %s1757_s20 = scalar_lea.vmem [#allocation8], %s1150_s0  ;;  %p1159_p6 = scmp.ne.s32.totalorder %s1499_s27, 0 }
  0x41   : > { %s372_s17 = scalar_select %p371_p10, %s1499_s27, 1 }
  0x42   : > { %389 = sbr.rel (%p1159_p6) target bundleno = 80 (0x50), region = 56 }
  0x43   : > { %s1187_s10 = sshll.u32 %s372_s17, 4  ;;  %s1189_s21 = sshll.u32 %s372_s17, 5 }
  0x44   : > { %s1750_s6 = scalar_lea.vmem %s2061_s2, %s1187_s10  ;;  %s1755_s9 = scalar_lea.vmem %s2063_s4, %s1189_s21 }
  0x45   : > { %s1745_s24 = scalar_lea.vmem %s2100_s1, %s1187_s10 }
  0x47   : > { %v390_v0 = vld [vmem:[%s1727_s15] sm:$0xff]  ;;  %v391_v1 = vld [vmem:[%s1727_s15 + $0x8] sm:$0xff]  ;;  %v392_v2 = vld [vmem:[%s1727_s15 + $0x10] sm:$0xff] }
  0x48   : > { %398 = vst [vmem:[#allocation2 + $0x30] sm:$0xff] %v390_v0  ;;  %v393_v3 = vld [vmem:[%s1727_s15 + $0x18] sm:$0xff]  ;;  %v394_v4 = vld [vmem:[%s1727_s15 + $0x20] sm:$0xff]  ;;  %v395_v5 = vld [vmem:[%s1727_s15 + $0x28] sm:$0xff] }
  0x49   : > { %399 = vst [vmem:[#allocation2] sm:$0xff] %v391_v1  ;;  %v396_v6 = vld [vmem:[%s1727_s15 + $0x30] sm:$0xff]  ;;  %v397_v7 = vld [vmem:[%s1727_s15 + $0x38] sm:$0xff] }
  0x4a   : > { %400 = vst [vmem:[#allocation2 + $0x18] sm:$0xff] %v392_v2 }
  0x4b   : > { %401 = vst [vmem:[#allocation2 + $0x10] sm:$0xff] %v393_v3 }
  0x4c   : > { %402 = vst [vmem:[#allocation2 + $0x8] sm:$0xff] %v394_v4 }
  0x4d   : > { %403 = vst [vmem:[#allocation2 + $0x20] sm:$0xff] %v395_v5 }
  0x4e   : > { %404 = vst [vmem:[#allocation2 + $0x28] sm:$0xff] %v396_v6 }
  0x4f   : > { %405 = vst [vmem:[#allocation2 + $0x38] sm:$0xff] %v397_v7 }
  0x50 PF: > { %v417_v10 = vld [vmem:[%s1750_s6 + $0x8] sm:$0xff]  ;;  %v1519_v13 = vmov 0   ;;  %v1785_v16 = vld [vmem:[#allocation2 + $0x30] sm:$0xff]  ;;  %v1788_v17 = vld [vmem:[#allocation2] sm:$0xff]  ;;  %vm428_vm0 = vcmask 261120   ;;  %s1520_s0 = smov 111  }
  0x51   : > { %1326 = vset.pattern.permute.xlu0 %v1519_v13  ;;  %v1779_v14 = vld [vmem:[#allocation2 + $0x18] sm:$0xff]  ;;  %1327 = vset.pattern.permute.xlu1 %v1519_v13  ;;  %v406_v18 = vld [vmem:[%s1745_s24] sm:$0xff]  ;;  %v407_v20 = vld [vmem:[%s1745_s24 + $0x8] sm:$0xff]  ;;  %s1521_s15 = smov 113   ;;  %s1522_s17 = smov 112   ;;  %vm714_vm5 = vcmask 908288  }
  0x52   : > { %425 = vperm.xlu0 %1326, %v417_v10   ;;  %v1782_v15 = vld [vmem:[#allocation2 + $0x10] sm:$0xff]  ;;  %1328 = vset.pattern.permute.xlu2 %v1519_v13  ;;  %v416_v19 = vld [vmem:[%s1750_s6] sm:$0xff]  ;;  %s1523_s10 = smov 1   ;;  %s1524_s21 = smov 15   ;;  %v737_v4 = vld [vmem:[%s1734_s19 + $0x8] sm:$0xff]  ;;  %vm536_vm6 = vcmask 130048  }
  0x53   : > { %v1775_v11 = vld [vmem:[#allocation2 + $0x8] sm:$0xff]  ;;  %s1525_s14 = smov 127   ;;  %s2076_s12 = smov 16   ;;  %v746_v39 = vld [vmem:[%s1755_s9 + $0x10] sm:$0xff]  ;;  %v739_v7 = vld [vmem:[%s1734_s19 + $0x18] sm:$0xff]  ;;  %vm684_vm7 = vcmask 916480  }
  0x54   : > { %v1777_v12 = vld [vmem:[#allocation2 + $0x20] sm:$0xff]  ;;  %s1527_s24 = smov 17   ;;  %s2101_s6 = sld [smem:[#allocation20_spill]]  ;;  %vm654_vm8 = vcmask 924672   ;;  %vm624_vm9 = vcmask 1039360   ;;  %vm596_vm10 = vcmask 7168  }
  0x55   : > { %v1768_v8 = vld [vmem:[#allocation2 + $0x28] sm:$0xff]  ;;  %vm566_vm11 = vcmask 121856   ;;  %vm507_vm12 = vcmask 138240   ;;  %p1179_p0 = scmp.ne.s32.totalorder %s1499_s27, 1 }
  0x56   : > { %v1770_v9 = vld [vmem:[#allocation2 + $0x38] sm:$0xff]  ;;  %447 = vmatpush.msra.mxu0 %v1768_v8 }
  0x57   : > { %470 = vmatpush.msra.mxu1 %v1770_v9 }
  0x58   : > { %448 = vmatpush.msra.mxu0 %v1775_v11 }
  0x59   : > { %471 = vmatpush.msra.mxu1 %v1777_v12 }
  0x5a   : > { %449 = vmatpush.msra.mxu0 %v1779_v14  ;;  %420 = vperm.xlu0 %1326, %v416_v19   ;;  %v1170_v54 = vld [vmem:[%s2101_s6 + $0x10] sm:$0x3]  ;;  %v1169_v10 = vld [vmem:[%s2101_s6 + $0xe] sm:$0x3] }
  0x5b   : > { %472 = vmatpush.msra.mxu1 %v1782_v15  ;;  %v728_v58 = vperm.slane %v1170_v54, 0  ;;  %v729_v59 = vperm.slane %v1170_v54, 1  ;;  %v698_v19 = vperm.slane %v1169_v10, 0 }
  0x5c   : > { %450 = vmatpush.msra.mxu0 %v1785_v16 }
  0x5d   : > { %473 = vmatpush.msra.mxu1 %v1788_v17  ;;  %1160 = vmatmul.msk.f32.vlgmr.msra.gmra.mxu0 %vm428_vm0, %v406_v18 }
  0x5e   : > { %1162 = vmatmul.msk.f32.vlgmr.msra.gmra.mxu1 %vm428_vm0, %v406_v18 }
  0x65   : > { %1161 = vmatmul.msk.f32.gmra.mxu0 %vm428_vm0, %v407_v20 }
  0x66   : > { %1163 = vmatmul.msk.f32.gmra.mxu1 %vm428_vm0, %v407_v20  ;;  %v699_v20 = vperm.slane %v1169_v10, 1 }
  0xc4   : > { %v426_v21 = vpop.permute.xlu0 %425 }
  0xcc   : > { %v421_v22 = vpop.permute.xlu0 %420 }
  0xda   : > { %v452_v23 = vpop.f32.mrf.mxu0 }
  0xdb   : > { %v453_v24 = vadd.f32 %v452_v23, %v421_v22  ;;  %v475_v25 = vpop.f32.mrf.mxu1 }
  0xdc   : > { %v476_v28 = vadd.f32 %v475_v25, %v421_v22 }
  0xdd   : > { %vm481_vm1 = vcmp.gt.f32.partialorder %v453_v24, 0.0  ;;  %v485_v26 = vmul.f32 0.1, %v453_v24 }
  0xde   : > { %v486_v29 = vmul.f32 0.1, %v476_v28  ;;  %vm482_vm2 = vcmp.gt.f32.partialorder %v476_v28, 0.0 }
  0xdf   : > { %v1796_v27 = vsel %vm481_vm1, %v453_v24, %v485_v26 }
  0xe0   : > { %706 = vrot.lane.b32.xlu0 %v1796_v27, %s1520_s0  ;;  %646 = vrot.lane.b32.xlu1 %v1796_v27, %s1521_s15  ;;  %v1804_v30 = vsel %vm482_vm2, %v476_v28, %v486_v29 }
  0xe1   : > { %676 = vrot.lane.b32.xlu2 %v1796_v27, %s1522_s17 }
  0xe2   : > { %v455_v31 = vpop.f32.mrf.mxu0 }
  0xe3   : > { %v456_v32 = vadd.f32 %v455_v31, %v426_v21  ;;  %v478_v34 = vpop.f32.mrf.mxu1 }
  0xe4   : > { %v479_v36 = vadd.f32 %v478_v34, %v426_v21 }
  0xe5   : > { %v487_v33 = vmul.f32 0.1, %v456_v32  ;;  %vm483_vm3 = vcmp.gt.f32.partialorder %v456_v32, 0.0 }
  0xe6   : > { %v488_v37 = vmul.f32 0.1, %v479_v36  ;;  %vm484_vm4 = vcmp.gt.f32.partialorder %v479_v36, 0.0 }
  0xe7   : > { %v1817_v35 = vsel %vm483_vm3, %v456_v32, %v487_v33  ;;  %v1168_v32 = vld [vmem:[%s2101_s6 + $0xc] sm:$0x3] }
  0xe8   : > { %592 = vrot.lane.b32.xlu0 %v1796_v27, %s1523_s10  ;;  %708 = vrot.lane.b32.xlu1 %v1804_v30, %s1520_s0  ;;  %v1824_v38 = vsel %vm484_vm4, %v479_v36, %v488_v37  ;;  %v741_v33 = vld [vmem:[%s1734_s19 + $0x28] sm:$0xff]  ;;  %v668_v36 = vperm.slane %v1168_v32, 0  ;;  %v669_v37 = vperm.slane %v1168_v32, 1 }
  0xe9   : > { %678 = vrot.lane.b32.xlu2 %v1804_v30, %s1522_s17 }
  0xf0   : > { %556 = vrot.lane.b32.xlu0 %v1804_v30, %s1524_s21  ;;  %616 = vrot.lane.b32.xlu1 %v1796_v27, %s1525_s14 }
  0xf1   : > { %648 = vrot.lane.b32.xlu2 %v1804_v30, %s1521_s15 }
  0xf8   : > { %650 = vrot.lane.b32.xlu0 %v1817_v35, %s1521_s15  ;;  %562 = vrot.lane.b32.xlu1 %v1796_v27, %s1524_s21 }
  0xf9   : > { %618 = vrot.lane.b32.xlu2 %v1804_v30, %s1525_s14 }
 0x100   : > { %712 = vrot.lane.b32.xlu0 %v1824_v38, %s1520_s0  ;;  %526 = vrot.lane.b32.xlu1 %v1804_v30, %s2076_s12 }
 0x101   : > { %586 = vrot.lane.b32.xlu2 %v1804_v30, %s1523_s10 }
 0x108   : > { %622 = vrot.lane.b32.xlu0 %v1824_v38, %s1525_s14  ;;  %680 = vrot.lane.b32.xlu1 %v1817_v35, %s1522_s17 }
 0x109   : > { %532 = vrot.lane.b32.xlu2 %v1796_v27, %s2076_s12 }
 0x110   : > { %588 = vrot.lane.b32.xlu0 %v1824_v38, %s1523_s10  ;;  %682 = vrot.lane.b32.xlu1 %v1824_v38, %s1522_s17 }
 0x111   : > { %710 = vrot.lane.b32.xlu2 %v1817_v35, %s1520_s0 }
 0x118   : > { %534 = vrot.lane.b32.xlu0 %v1817_v35, %s2076_s12  ;;  %652 = vrot.lane.b32.xlu1 %v1824_v38, %s1521_s15 }
 0x119   : > { %620 = vrot.lane.b32.xlu2 %v1817_v35, %s1525_s14 }
 0x120   : > { %497 = vrot.lane.b32.xlu0 %v1824_v38, %s1527_s24  ;;  %594 = vrot.lane.b32.xlu1 %v1817_v35, %s1523_s10 }
 0x121   : > { %564 = vrot.lane.b32.xlu2 %v1817_v35, %s1524_s21 }
 0x128   : > { %503 = vrot.lane.b32.xlu0 %v1796_v27, %s1527_s24  ;;  %558 = vrot.lane.b32.xlu1 %v1824_v38, %s1524_s21 }
 0x129   : > { %528 = vrot.lane.b32.xlu2 %v1824_v38, %s2076_s12 }
 0x130   : > { %760 = vperm.xlu0 %1326, %v746_v39   ;;  %505 = vrot.lane.b32.xlu1 %v1817_v35, %s1527_s24 }
 0x131   : > { %495 = vrot.lane.b32.xlu2 %v1804_v30, %s1527_s24 }
 0x13b   : > { %v677_v40 = vpop.permute.xlu2 %676 }
 0x143   : > { %v679_v41 = vpop.permute.xlu2 %678 }
 0x144   : > { %v685_v21 = vsel %vm684_vm7, %v677_v40, %v679_v41  ;;  %v693_v22 = vsel %vm684_vm7, %v679_v41, %v677_v40 }
 0x145   : > { %v702_v29 = vmul.f32 %v698_v19, %v685_v21  ;;  %v703_v31 = vmul.f32 %v699_v20, %v693_v22 }
 0x14b   : > { %v1861_v42 = vpop.permute.xlu2 %648 }
 0x152   : > { %v707_v43 = vpop.permute.xlu0 %706  ;;  %v1863_v44 = vpop.permute.xlu1 %646 }
 0x153   : > { %v1865_v45 = vpop.permute.xlu2 %618  ;;  %v655_v39 = vsel %vm654_vm8, %v1863_v44, %v1861_v42  ;;  %v663_v40 = vsel %vm654_vm8, %v1861_v42, %v1863_v44 }
 0x154   : > { %v672_v42 = vmul.f32 %v668_v36, %v655_v39  ;;  %v673_v44 = vmul.f32 %v669_v37, %v663_v40 }
 0x15a   : > { %v1867_v46 = vpop.permute.xlu0 %592  ;;  %v709_v47 = vpop.permute.xlu1 %708 }
 0x15b   : > { %v1869_v48 = vpop.permute.xlu2 %586  ;;  %v715_v60 = vsel %vm714_vm5, %v707_v43, %v709_v47  ;;  %v723_v61 = vsel %vm714_vm5, %v709_v47, %v707_v43  ;;  %v1167_v47 = vld [vmem:[%s2101_s6 + $0xa] sm:$0x3] }
 0x15c   : > { %v732_v2 = vmul.f32 %v728_v58, %v715_v60  ;;  %v733_v3 = vmul.f32 %v729_v59, %v723_v61  ;;  %v638_v61 = vperm.slane %v1167_v47, 0  ;;  %v603_v21 = vsel %vm596_vm10, %v1869_v48, %v1867_v46 }
 0x162   : > { %v1871_v49 = vpop.permute.xlu0 %556  ;;  %v1873_v50 = vpop.permute.xlu1 %616 }
 0x163   : > { %v1875_v51 = vpop.permute.xlu2 %532 }
 0x16a   : > { %v1877_v52 = vpop.permute.xlu0 %650  ;;  %v1879_v53 = vpop.permute.xlu1 %562 }
 0x16b   : > { %v711_v55 = vpop.permute.xlu2 %710 }
 0x172   : > { %v713_v56 = vpop.permute.xlu0 %712  ;;  %v1884_v57 = vpop.permute.xlu1 %526 }
 0x173   : > { %v724_v62 = vsel %vm714_vm5, %v713_v56, %v711_v55  ;;  %v716_v63 = vsel %vm714_vm5, %v711_v55, %v713_v56  ;;  %v621_v25 = vpop.permute.xlu2 %620  ;;  %v537_v39 = vsel %vm536_vm6, %v1875_v51, %v1884_v57  ;;  %v543_v40 = vsel %vm536_vm6, %v1884_v57, %v1875_v51 }
 0x174   : > { %v734_v0 = vmul.f32 %v728_v58, %v716_v63  ;;  %v735_v1 = vmul.f32 %v729_v59, %v724_v62  ;;  %v639_v62 = vperm.slane %v1167_v47, 1  ;;  %v633_v63 = vsel %vm624_vm9, %v1865_v45, %v1873_v50 }
 0x176   : > { %823 = vmatpush.msra.mxu3 %v734_v0  ;;  %881 = vmatpush.msrb.mxu0 %v735_v1 }
 0x178   : > { %824 = vmatpush.msra.mxu3 %v732_v2  ;;  %882 = vmatpush.msrb.mxu0 %v733_v3  ;;  %v1919_v2 = vld [vmem:[%s1734_s19 + $0x38] sm:$0xff] }
 0x179   : > { %1171 = vmatmul.msk.f32.vlgmr.msra.gmra.mxu3 %vm536_vm6, %v737_v4  ;;  %1175 = vmatmul.msk.f32.vlgmr.msrb.gmra.mxu0 %vm536_vm6, %v737_v4 }
 0x17a   : > { %v623_v5 = vpop.permute.xlu0 %622  ;;  %v681_v6 = vpop.permute.xlu1 %680 }
 0x17b   : > { %v626_v58 = vsel %vm624_vm9, %v621_v25, %v623_v5  ;;  %v634_v59 = vsel %vm624_vm9, %v623_v5, %v621_v25  ;;  %v565_v60 = vpop.permute.xlu2 %564  ;;  %v643_v5 = vmul.f32 %v639_v62, %v633_v63 }
 0x17c   : > { %v644_v0 = vmul.f32 %v638_v61, %v626_v58  ;;  %v645_v1 = vmul.f32 %v639_v62, %v634_v59  ;;  %v745_v62 = vld [vmem:[%s1755_s9 + $0x8] sm:$0xff] }
 0x17d   : > { %755 = vperm.xlu2 %1328, %v745_v62  }
 0x181   : > { %1172 = vmatmul.msk.f32.gmra.mxu3 %vm536_vm6, %v739_v7  ;;  %1176 = vmatmul.msk.f32.gmra.mxu0 %vm536_vm6, %v739_v7 }
 0x182   : > { %v1895_v13 = vpop.permute.xlu0 %588  ;;  %v683_v18 = vpop.permute.xlu1 %682 }
 0x183   : > { %v694_v23 = vsel %vm684_vm7, %v683_v18, %v681_v6  ;;  %v686_v24 = vsel %vm684_vm7, %v681_v6, %v683_v18  ;;  %v744_v6 = vld [vmem:[%s1755_s9] sm:$0xff]  ;;  %v529_v22 = vpop.permute.xlu2 %528 }
 0x184   : > { %v704_v26 = vmul.f32 %v698_v19, %v686_v24  ;;  %v705_v28 = vmul.f32 %v699_v20, %v694_v23  ;;  %750 = vperm.xlu1 %1327, %v744_v6   ;;  %v597_v20 = vsel %vm596_vm10, %v1867_v46, %v1869_v48  ;;  %v742_v6 = vld [vmem:[%s1734_s19 + $0x30] sm:$0xff] }
 0x186   : > { %780 = vmatpush.msra.mxu2 %v704_v26  ;;  %838 = vmatpush.msrb.mxu1 %v705_v28  ;;  %v1164_v26 = vld [vmem:[%s2101_s6 + $0x2] sm:$0x3] }
 0x187   : > { %1191 = vmatpush.msrb.mxu3 %v705_v28  ;;  %v573_v28 = vsel %vm566_vm11, %v1871_v49, %v1879_v53 }
 0x188   : > { %781 = vmatpush.msra.mxu2 %v702_v29  ;;  %839 = vmatpush.msrb.mxu1 %v703_v31 }
 0x189   : > { %1192 = vmatpush.msrb.mxu3 %v703_v31  ;;  %1177 = vmatmul.msk.f32.gmra.mxu0 %vm536_vm6, %v741_v33 }
 0x18a   : > { %v653_v34 = vpop.permute.xlu1 %652  ;;  %1173 = vmatmul.msk.f32.gmra.mxu3 %vm536_vm6, %v741_v33  ;;  %v1912_v54 = vpop.permute.xlu0 %534 }
 0x18b   : > { %v656_v41 = vsel %vm654_vm8, %v1877_v52, %v653_v34  ;;  %v664_v43 = vsel %vm654_vm8, %v653_v34, %v1877_v52  ;;  %v625_v52 = vsel %vm624_vm9, %v1873_v50, %v1865_v45  ;;  %v1166_v45 = vld [vmem:[%s2101_s6 + $0x6] sm:$0x3]  ;;  %v544_v33 = vsel %vm536_vm6, %v529_v22, %v1912_v54 }
 0x18c   : > { %v674_v55 = vmul.f32 %v668_v36, %v656_v41  ;;  %v675_v56 = vmul.f32 %v669_v37, %v664_v43  ;;  %v642_v4 = vmul.f32 %v638_v61, %v625_v52  ;;  %v608_v18 = vperm.slane %v1166_v45, 0  ;;  %v516_v41 = vld [vmem:[%s2101_s6] sm:$0x3] }
 0x18d   : > { %v609_v19 = vperm.slane %v1166_v45, 1  ;;  %v548_v34 = vperm.slane %v1164_v26, 0  ;;  %v538_v36 = vsel %vm536_vm6, %v1912_v54, %v529_v22  ;;  %v549_v37 = vperm.slane %v1164_v26, 1 }
 0x18e   : > { %782 = vmatpush.msra.mxu2 %v674_v55  ;;  %840 = vmatpush.msrb.mxu1 %v675_v56  ;;  %v612_v46 = vmul.f32 %v608_v18, %v603_v21  ;;  %v496_v55 = vpop.permute.xlu2 %495  ;;  %v518_v58 = vperm.slane %v516_v41, 0  ;;  %v519_v59 = vperm.slane %v516_v41, 1 }
 0x18f   : > { %1193 = vmatpush.msrb.mxu3 %v675_v56  ;;  %v613_v48 = vmul.f32 %v609_v19, %v597_v20  ;;  %v554_v47 = vmul.f32 %v548_v34, %v544_v33  ;;  %v555_v54 = vmul.f32 %v549_v37, %v538_v36  ;;  %v552_v51 = vmul.f32 %v548_v34, %v543_v40 }
 0x190   : > { %783 = vmatpush.msra.mxu2 %v672_v42  ;;  %841 = vmatpush.msrb.mxu1 %v673_v44  ;;  %v553_v57 = vmul.f32 %v549_v37, %v537_v39 }
 0x191   : > { %1194 = vmatpush.msrb.mxu3 %v673_v44  ;;  %1178 = vmatmul.msk.f32.gmra.mxu0 %vm536_vm6, %v1919_v2 }
 0x192   : > { %v595_v3 = vpop.permute.xlu1 %594  ;;  %784 = vmatpush.msra.mxu2 %v644_v0  ;;  %842 = vmatpush.msrb.mxu1 %v645_v1  ;;  %v1929_v10 = vpop.permute.xlu0 %497 }
 0x193   : > { %1195 = vmatpush.msrb.mxu3 %v645_v1  ;;  %v598_v50 = vsel %vm596_vm10, %v595_v3, %v1895_v13  ;;  %v604_v7 = vsel %vm596_vm10, %v1895_v13, %v595_v3  ;;  %v1165_v13 = vld [vmem:[%s2101_s6 + $0x4] sm:$0x3] }
 0x194   : > { %785 = vmatpush.msra.mxu2 %v642_v4  ;;  %843 = vmatpush.msrb.mxu1 %v643_v5  ;;  %v615_v23 = vmul.f32 %v609_v19, %v598_v50  ;;  %v579_v25 = vperm.slane %v1165_v13, 1  ;;  %v736_v3 = vld [vmem:[%s1734_s19] sm:$0xff]  ;;  %v738_v4 = vld [vmem:[%s1734_s19 + $0x10] sm:$0xff] }
 0x195   : > { %1196 = vmatpush.msrb.mxu3 %v643_v5  ;;  %v740_v5 = vld [vmem:[%s1734_s19 + $0x20] sm:$0xff] }
 0x196   : > { %786 = vmatpush.msra.mxu2 %v1817_v35  ;;  %844 = vmatpush.msrb.mxu1 %v1824_v38  ;;  %v614_v35 = vmul.f32 %v608_v18, %v604_v7 }
 0x197   : > { %1197 = vmatpush.msrb.mxu3 %v1824_v38  ;;  %v578_v38 = vperm.slane %v1165_v13, 0 }
 0x198   : > { %787 = vmatpush.msra.mxu2 %v1796_v27  ;;  %845 = vmatpush.msrb.mxu1 %v1804_v30  ;;  %v567_v27 = vsel %vm566_vm11, %v1879_v53, %v1871_v49 }
 0x199   : > { %1198 = vmatpush.msrb.mxu3 %v1804_v30  ;;  %v582_v49 = vmul.f32 %v578_v38, %v573_v28  ;;  %v583_v53 = vmul.f32 %v579_v25, %v567_v27 }
 0x19a   : > { %v559_v24 = vpop.permute.xlu1 %558  ;;  %788 = vmatpush.msra.mxu2 %v614_v35  ;;  %846 = vmatpush.msrb.mxu1 %v615_v23  ;;  %v504_v43 = vpop.permute.xlu0 %503 }
 0x19b   : > { %v568_v30 = vsel %vm566_vm11, %v565_v60, %v559_v24  ;;  %v574_v29 = vsel %vm566_vm11, %v559_v24, %v565_v60  ;;  %1199 = vmatpush.msrb.mxu3 %v615_v23  ;;  %v747_v60 = vld [vmem:[%s1755_s9 + $0x18] sm:$0xff]  ;;  %v514_v42 = vsel %vm507_vm12, %v496_v55, %v504_v43  ;;  %v508_v52 = vsel %vm507_vm12, %v504_v43, %v496_v55 }
 0x19c   : > { %789 = vmatpush.msra.mxu2 %v612_v46  ;;  %847 = vmatpush.msrb.mxu1 %v613_v48  ;;  %v584_v31 = vmul.f32 %v578_v38, %v574_v29  ;;  %v585_v32 = vmul.f32 %v579_v25, %v568_v30  ;;  %v522_v1 = vmul.f32 %v518_v58, %v514_v42 }
 0x19d   : > { %1200 = vmatpush.msrb.mxu3 %v613_v48  ;;  %765 = vperm.xlu1 %1327, %v747_v60  }
 0x19e   : > { %790 = vmatpush.msra.mxu2 %v584_v31  ;;  %848 = vmatpush.msrb.mxu1 %v585_v32 }
 0x19f   : > { %1201 = vmatpush.msrb.mxu3 %v585_v32 }
 0x1a0   : > { %791 = vmatpush.msra.mxu2 %v582_v49  ;;  %849 = vmatpush.msrb.mxu1 %v583_v53 }
 0x1a1   : > { %1202 = vmatpush.msrb.mxu3 %v583_v53 }
 0x1a2   : > { %1174 = vmatmul.msk.f32.gmra.mxu3 %vm536_vm6, %v1919_v2  ;;  %v506_v56 = vpop.permute.xlu1 %505  ;;  %792 = vmatpush.msra.mxu2 %v554_v47  ;;  %v523_v2 = vmul.f32 %v519_v59, %v508_v52  ;;  %v761_v33 = vpop.permute.xlu0 %760 }
 0x1a3   : > { %v509_v44 = vsel %vm507_vm12, %v506_v56, %v1929_v10  ;;  %v515_v61 = vsel %vm507_vm12, %v1929_v10, %v506_v56  ;;  %850 = vmatpush.msrb.mxu1 %v555_v54  ;;  %1203 = vmatpush.msrb.mxu3 %v555_v54 }
 0x1a4   : > { %793 = vmatpush.msra.mxu2 %v552_v51  ;;  %v524_v63 = vmul.f32 %v518_v58, %v515_v61  ;;  %v525_v0 = vmul.f32 %v519_v59, %v509_v44 }
 0x1a5   : > { %851 = vmatpush.msrb.mxu1 %v553_v57  ;;  %1204 = vmatpush.msrb.mxu3 %v553_v57 }
 0x1a6   : > { %794 = vmatpush.msra.mxu2 %v524_v63 }
 0x1a7   : > { %852 = vmatpush.msrb.mxu1 %v525_v0  ;;  %1205 = vmatpush.msrb.mxu3 %v525_v0 }
 0x1a8   : > { %795 = vmatpush.msra.mxu2 %v522_v1 }
 0x1a9   : > { %853 = vmatpush.msrb.mxu1 %v523_v2  ;;  %1206 = vmatpush.msrb.mxu3 %v523_v2 }
 0x1aa   : > { %796 = vmatmul.f32.vlgmr.msra.gmra.mxu2 %v736_v3  ;;  %857 = vmatmul.f32.vlgmr.msrb.gmra.mxu3 %v738_v4 }
 0x1ab   : > { %854 = vmatmul.f32.vlgmr.msrb.gmra.mxu1 %v736_v3 }
 0x1b2   : > { %799 = vmatmul.f32.gmra.mxu2 %v738_v4  ;;  %860 = vmatmul.f32.gmra.mxu3 %v740_v5 }
 0x1ba   : > { %802 = vmatmul.f32.gmra.mxu2 %v740_v5  ;;  %863 = vmatmul.f32.gmra.mxu3 %v742_v6 }
 0x1c2   : > { %805 = vmatmul.f32.gmra.mxu2 %v742_v6 }
 0x1d7   : > { %v756_v35 = vpop.permute.xlu2 %755 }
 0x1f6   : > { %v884_v10 = vpop.f32.mrf.mxu0  ;;  %v751_v19 = vpop.permute.xlu1 %750 }
 0x1fc   : > { %v826_v45 = vpop.f32.mrf.mxu3 }
 0x1fe   : > { %v887_v21 = vpop.f32.mrf.mxu0 }
 0x204   : > { %v829_v50 = vpop.f32.mrf.mxu3 }
 0x206   : > { %v890_v31 = vpop.f32.mrf.mxu0 }
 0x20d   : > { %v1982_v7 = vpop.f32.mrf.mxu3 }
 0x20e   : > { %v893_v60 = vpop.f32.mrf.mxu0 }
 0x20f   : > { %v766_v58 = vpop.permute.xlu1 %765 }
 0x225   : > { %v1984_v18 = vpop.f32.mrf.mxu3 }
 0x228   : > { %v855_v20 = vpop.f32.mrf.mxu1 }
 0x229   : > { %v856_v13 = vadd.f32 %v855_v20, %v751_v19 }
 0x22b   : > { %v885_v22 = vadd.f32 %v884_v10, %v856_v13 }
 0x22d   : > { %vm897_vm13 = vcmp.gt.f32.partialorder %v885_v22, 0.0  ;;  %v905_v23 = vmul.f32 0.1, %v885_v22  ;;  %v797_v24 = vpop.f32.mrf.mxu2  ;;  %v858_v46 = vpop.f32.mrf.mxu3 }
 0x22e   : > { %v798_v48 = vadd.f32 %v797_v24, %v751_v19  ;;  %v859_v38 = vadd.f32 %v858_v46, %v756_v35 }
 0x22f   : > { %v913_v25 = vsel %vm897_vm13, %v885_v22, %v905_v23 }
 0x230   : > { %v921_v26 = vadd.f32 %v913_v25, %v1788_v17  ;;  %v827_v27 = vadd.f32 %v826_v45, %v798_v48  ;;  %v888_v28 = vadd.f32 %v887_v21, %v859_v38 }
 0x232   : > { %vm929_vm14 = vcmp.gt.f32.partialorder %v921_v26, 0.0  ;;  %v937_v30 = vmul.f32 0.1, %v921_v26  ;;  %vm896_vm15 = vcmp.gt.f32.partialorder %v827_v27, 0.0  ;;  %v904_v29 = vmul.f32 0.1, %v827_v27 }
 0x233   : > { %vm899_vm0 = vcmp.gt.f32.partialorder %v888_v28, 0.0  ;;  %v907_v32 = vmul.f32 0.1, %v888_v28 }
 0x234   : > { %v945_v34 = vsel %vm929_vm14, %v921_v26, %v937_v30  ;;  %v912_v36 = vsel %vm896_vm15, %v827_v27, %v904_v29 }
 0x235   : > { %953 = vst [vmem:[#allocation2] sm:$0xff] %v945_v34  ;;  %v920_v49 = vadd.f32 %v912_v36, %v1785_v16  ;;  %v915_v53 = vsel %vm899_vm0, %v888_v28, %v907_v32  ;;  %v800_v37 = vpop.f32.mrf.mxu2  ;;  %v861_v39 = vpop.f32.mrf.mxu3 }
 0x236   : > { %v923_v17 = vadd.f32 %v915_v53, %v1782_v15  ;;  %v801_v40 = vadd.f32 %v800_v37, %v756_v35  ;;  %v862_v41 = vadd.f32 %v861_v39, %v761_v33 }
 0x237   : > { %vm928_vm1 = vcmp.gt.f32.partialorder %v920_v49, 0.0  ;;  %v936_v43 = vmul.f32 0.1, %v920_v49 }
 0x238   : > { %vm931_vm2 = vcmp.gt.f32.partialorder %v923_v17, 0.0  ;;  %v939_v47 = vmul.f32 0.1, %v923_v17  ;;  %v830_v54 = vadd.f32 %v829_v50, %v801_v40  ;;  %v891_v55 = vadd.f32 %v890_v31, %v862_v41 }
 0x239   : > { %v944_v56 = vsel %vm928_vm1, %v920_v49, %v936_v43 }
 0x23a   : > { %952 = vst [vmem:[#allocation2 + $0x30] sm:$0xff] %v944_v56  ;;  %v947_v51 = vsel %vm931_vm2, %v923_v17, %v939_v47  ;;  %vm898_vm3 = vcmp.gt.f32.partialorder %v830_v54, 0.0  ;;  %v906_v57 = vmul.f32 0.1, %v830_v54  ;;  %vm901_vm4 = vcmp.gt.f32.partialorder %v891_v55, 0.0 }
 0x23b   : > { %955 = vst [vmem:[#allocation2 + $0x10] sm:$0xff] %v947_v51  ;;  %v909_v16 = vmul.f32 0.1, %v891_v55 }
 0x23c   : > { %v914_v59 = vsel %vm898_vm3, %v830_v54, %v906_v57 }
 0x23d   : > { %v922_v15 = vadd.f32 %v914_v59, %v1779_v14  ;;  %v917_v42 = vsel %vm901_vm4, %v891_v55, %v909_v16  ;;  %v803_v44 = vpop.f32.mrf.mxu2  ;;  %v864_v61 = vpop.f32.mrf.mxu3 }
 0x23e   : > { %v925_v62 = vadd.f32 %v917_v42, %v1777_v12  ;;  %v804_v52 = vadd.f32 %v803_v44, %v761_v33  ;;  %v865_v63 = vadd.f32 %v864_v61, %v766_v58 }
 0x23f   : > { %vm930_vm5 = vcmp.gt.f32.partialorder %v922_v15, 0.0  ;;  %v938_v0 = vmul.f32 0.1, %v922_v15 }
 0x240   : > { %vm933_vm6 = vcmp.gt.f32.partialorder %v925_v62, 0.0  ;;  %v941_v1 = vmul.f32 0.1, %v925_v62  ;;  %v833_v2 = vadd.f32 %v1982_v7, %v804_v52  ;;  %v894_v3 = vadd.f32 %v893_v60, %v865_v63 }
 0x241   : > { %v946_v4 = vsel %vm930_vm5, %v922_v15, %v938_v0 }
 0x242   : > { %954 = vst [vmem:[#allocation2 + $0x18] sm:$0xff] %v946_v4  ;;  %v949_v5 = vsel %vm933_vm6, %v925_v62, %v941_v1  ;;  %vm900_vm7 = vcmp.gt.f32.partialorder %v833_v2, 0.0  ;;  %v908_v6 = vmul.f32 0.1, %v833_v2  ;;  %vm903_vm8 = vcmp.gt.f32.partialorder %v894_v3, 0.0 }
 0x243   : > { %957 = vst [vmem:[#allocation2 + $0x20] sm:$0xff] %v949_v5  ;;  %v911_v14 = vmul.f32 0.1, %v894_v3 }
 0x244   : > { %v916_v45 = vsel %vm900_vm7, %v833_v2, %v908_v6 }
 0x245   : > { %v924_v12 = vadd.f32 %v916_v45, %v1775_v11  ;;  %v919_v50 = vsel %vm903_vm8, %v894_v3, %v911_v14  ;;  %v806_v10 = vpop.f32.mrf.mxu2 }
 0x246   : > { %v927_v19 = vadd.f32 %v919_v50, %v1770_v9  ;;  %v807_v20 = vadd.f32 %v806_v10, %v766_v58 }
 0x247   : > { %vm932_vm9 = vcmp.gt.f32.partialorder %v924_v12, 0.0  ;;  %v940_v21 = vmul.f32 0.1, %v924_v12 }
 0x248   : > { %vm935_vm10 = vcmp.gt.f32.partialorder %v927_v19, 0.0  ;;  %v943_v7 = vmul.f32 0.1, %v927_v19  ;;  %v836_v13 = vadd.f32 %v1984_v18, %v807_v20 }
 0x249   : > { %v948_v22 = vsel %vm932_vm9, %v924_v12, %v940_v21 }
 0x24a   : > { %956 = vst [vmem:[#allocation2 + $0x8] sm:$0xff] %v948_v22  ;;  %v951_v35 = vsel %vm935_vm10, %v927_v19, %v943_v7  ;;  %vm902_vm11 = vcmp.gt.f32.partialorder %v836_v13, 0.0  ;;  %v910_v23 = vmul.f32 0.1, %v836_v13 }
 0x24b   : > { %959 = vst [vmem:[#allocation2 + $0x38] sm:$0xff] %v951_v35 }
 0x24c   : > { %v918_v24 = vsel %vm902_vm11, %v836_v13, %v910_v23 }
 0x24d   : > { %v926_v11 = vadd.f32 %v918_v24, %v1768_v8 }
 0x24e   : > { %963 = sbr.rel (%p1179_p0) target bundleno = 604 (0x25c), region = 60 }
 0x24f   : > { %vm934_vm12 = vcmp.gt.f32.partialorder %v926_v11, 0.0  ;;  %v942_v46 = vmul.f32 0.1, %v926_v11 }
 0x251   : > { %v950_v48 = vsel %vm934_vm12, %v926_v11, %v942_v46 }
 0x252   : > { %958 = vst [vmem:[#allocation2 + $0x28] sm:$0xff] %v950_v48 }
 0x253   : > { %v964_v9 = vld [vmem:[#allocation2 + $0x30] sm:$0xff]  ;;  %v965_v18 = vld [vmem:[#allocation2] sm:$0xff]  ;;  %v966_v38 = vld [vmem:[#allocation2 + $0x18] sm:$0xff] }
 0x254   : > { %972 = vst [vmem:[%s1757_s20] sm:$0xff] %v964_v9  ;;  %v967_v8 = vld [vmem:[#allocation2 + $0x10] sm:$0xff]  ;;  %v968_v25 = vld [vmem:[#allocation2 + $0x8] sm:$0xff]  ;;  %v969_v26 = vld [vmem:[#allocation2 + $0x20] sm:$0xff] }
 0x255   : > { %973 = vst [vmem:[%s1757_s20 + $0x8] sm:$0xff] %v965_v18  ;;  %v971_v28 = vld [vmem:[#allocation2 + $0x38] sm:$0xff] }
 0x256   : > { %974 = vst [vmem:[%s1757_s20 + $0x10] sm:$0xff] %v966_v38 }
 0x257   : > { %975 = vst [vmem:[%s1757_s20 + $0x18] sm:$0xff] %v967_v8 }
 0x258   : > { %976 = vst [vmem:[%s1757_s20 + $0x20] sm:$0xff] %v968_v25 }
 0x259   : > { %v970_v27 = vld [vmem:[#allocation2 + $0x28] sm:$0xff]  ;;  %977 = vst [vmem:[%s1757_s20 + $0x28] sm:$0xff] %v969_v26 }
 0x25a   : > { %978 = vst [vmem:[%s1757_s20 + $0x30] sm:$0xff] %v970_v27 }
 0x25b   : > { %979 = vst [vmem:[%s1757_s20 + $0x38] sm:$0xff] %v971_v28 }
 0x25c PF: > { %s2102_s27 = sld [smem:[#allocation13_spill]]  ;;  %s993_s14 = sshll.u32 %s1757_s20, 4  ;;  %s994_s14 = int_to_ptr.vmem [resolvable:$true] %s993_s14 }
 0x25d   : > { %s2104_s10 = sld [smem:[#allocation21_spill]]  ;;  %s981_s8 = scalar_lea.sflag [#allocation5], %s1723_s13 }
 0x262   : > { %s1190_s9 = sshll.u32 %s2102_s27, 6 }
 0x263   : > { %s992_s21 = scalar_lea.hbm %s2104_s10, %s1190_s9  ;;  %s1409_s27 = scalar_lea.hbm %s2104_s10, 128 }
 0x264   : > { %s995_s24 = sshll.u32 %s992_s21, 4  ;;  %s996_s24 = int_to_ptr.hbm [resolvable:$true] %s995_s24 }
 0x265   : > { %s1403_s11 = sshra.s32 %s996_s24, 4  ;;  %s1404_s11 = int_to_ptr.hbm [resolvable:$true] %s1403_s11 }
 0x266   : > { %s1405_s5 = scalar_lea.hbm %s1404_s11, 64  ;;  %p1410_p7 = scmp.lt.s32.totalorder %s1404_s11, %s2104_s10 }
 0x267   : > { %p1406_p2 = scmp.ne.s32.totalorder %s1404_s11, %s1405_s5  ;;  %p1411_p11 = scmp.lt.s32.totalorder %s1409_s27, %s1405_s5 }
 0x269   : > { %p1407_p4 = pnand %p1406_p2, %p1644_p8  ;;  %p1412_p12 = por %p1411_p11, %p1410_p7 }
 0x26b   : > { %p1408_p5 = pneg %p1407_p4 }
 0x26d   : > { %p1413_p13 = pnand %p1412_p12, %p1408_p5 }
 0x26f   : > { %1416 = shalt.err (!%p1413_p13)
}
 0x270   : > { %s1528_s13 = smov 256   ;;  %s2105_s20 = smov 16  }
 0x271   : > { %1211 = dma.vmem_to_hbm [thread:$0]  (%p1644_p8), %s994_s14, 1024, %s996_s24, %s981_s8, %s1528_s13, %s1528_s13, %s2105_s20  }
 0x272 PF: > { %s2106_s9 = sld [smem:[#allocation12_spill]]  ;;  %p1225_p1 = scmp.ge.s32.totalorder %s1515_s7, 2 }
 0x274   : > { %p1221_p3 = pnand %p1225_p1, %p1648_p9 }
 0x276   : > { %p1222_p10 = pneg %p1221_p3 }
 0x278   : > { %s1010_s17 = sand.u32 1, %s2106_s9  }
 0x279   : > { %s1011_s1 = scalar_lea.sflag [#allocation5], %s1010_s17 }
 0x27a   : > { %1470 = dma.done.wait (%p1222_p10), %s1011_s1, 1024  }
 0x27b   : > { %1472 = vsyncadd (%p1222_p10), %s1011_s1, 4294966272  ;;  %s25_s7 = sadd.s32 1, %s1515_s7   ;;  %s2108_s12 = sld [smem:[#allocation16_spill]] }
 0x27c   : > { %p22_p6 = scmp.ge.s32.totalorder %s25_s7, 6   ;;  %s2109_s19 = sld [smem:[#allocation17_spill]] }
 0x27d   : > { %s2110_s21 = smov %s1479_s22  ;;  %s2111_s22 = smov %s1483_s23 }
 0x27e   : > { %s2112_s23 = smov %s1700_s18  ;;  %s2113_s24 = smov %s1491_s25 }
 0x27f   : > { %s2114_s25 = smov %s1495_s26  ;;  %s2115_s26 = smov %s1708_s16 }
 0x280   : > { %s2116_s27 = smov %s1507_s29  ;;  %s2117_s28 = smov %s1511_s30 }
 0x281   : > { %s2118_s29 = smov %s2108_s12  ;;  %24 = sbr.rel (!%p22_p6) target bundleno = 16 (0x10), region = 126 }
 0x282   : > { %s2119_s30 = smov %s2109_s19 }
 0x286   :  { %1017 = vsyncpa [#allocation4], 1 }
 0x287   :  { %1019 = vsyncpa [#allocation4 + $0x1], 1 }
 0x288   :  { %1020 = vsyncpa [#allocation7], 1 }
 0x289   :  { %1022 = vsyncpa [#allocation7 + $0x1], 1 }
 0x28a   :  { %1023 = vsyncpa [#allocation5], 1 }
 0x28b   :  { %1025 = vsyncpa [#allocation5 + $0x1], 1 }

</bundles_post_ra>
